<compile_context>
chip_gen: v5e
topology: v5e:2x2
jax: 0.10.0
libtpu: 0.0.40
codegen_flags: <defaults>
</compile_context>

<pallas_src>
import functools

import jax
import jax.numpy as jnp
from jax.experimental import pallas as pl
from jax.experimental.pallas import tpu as pltpu


_MAX_TILE = 32768  # lanes per grid step (multiple of 128)


def _backproject_kernel(invk_ref, pix_ref, depth_ref, out_ref):
    # invk_ref : (B*9,)     f32  scalar-prefetched inv_K[:, :3, :3], in SMEM
    # pix_ref  : (2, T)     f32  x-row / y-row for this HW tile (batch-invariant)
    # depth_ref: (1, 1, T)  f32  depth tile for this batch
    # out_ref  : (1, 4, T)  f32  homogeneous cam points tile
    b = pl.program_id(1)          # grid = (hw_tiles, batch)
    tile = out_ref.shape[-1]

    base = b * 9
    k00 = invk_ref[base + 0]
    k01 = invk_ref[base + 1]
    k02 = invk_ref[base + 2]
    k10 = invk_ref[base + 3]
    k11 = invk_ref[base + 4]
    k12 = invk_ref[base + 5]
    k20 = invk_ref[base + 6]
    k21 = invk_ref[base + 7]
    k22 = invk_ref[base + 8]

    x = pix_ref[0:1, :]           # (1, T)
    y = pix_ref[1:2, :]           # (1, T)
    d = depth_ref[0]              # (1, T)

    # cam = depth * (inv_K[:3,:3] @ [x; y; 1]) as per-row VPU FMAs, stored with
    # slice writes (no concatenate, no MXU).
    out_ref[0, 0:1, :] = d * (k00 * x + k01 * y + k02)
    out_ref[0, 1:2, :] = d * (k10 * x + k11 * y + k12)
    out_ref[0, 2:3, :] = d * (k20 * x + k21 * y + k22)
    out_ref[0, 3:4, :] = jnp.ones((1, tile), jnp.float32)


def backproject_depth(depth, inv_K, batch_size, height, width):
    """depth: (B, 1, H, W) f32, inv_K: (B, 4, 4) f32 -> (B, 4, H*W) f32."""
    hw = height * width
    tile = hw if hw <= _MAX_TILE else _MAX_TILE   # full dim OR multiple of 128
    n_tiles = pl.cdiv(hw, tile)

    # Single (2, HW) pixel-coordinate buffer (x varies along width, y along
    # height), shared by all batches — the "ones" row is folded into the FMA.
    xs, ys = jnp.meshgrid(jnp.arange(width, dtype=jnp.float32),
                          jnp.arange(height, dtype=jnp.float32),
                          indexing="xy")
    pix_xy = jnp.stack([xs.reshape(-1), ys.reshape(-1)], axis=0)   # (2, HW)

    depth_flat = depth.reshape(batch_size, 1, hw).astype(jnp.float32)
    invk_flat = inv_K[:, :3, :3].astype(jnp.float32).reshape(batch_size * 9)

    # Pure HBM-streaming op: depth in, 4*HW out per batch, tiny pix/inv_K.
    bytes_accessed = 4 * (batch_size * hw + batch_size * 4 * hw
                          + 2 * hw + batch_size * 9)
    cost = pl.CostEstimate(flops=15 * batch_size * hw,
                           transcendentals=0,
                           bytes_accessed=bytes_accessed)

    out = pl.pallas_call(
        _backproject_kernel,
        out_shape=jax.ShapeDtypeStruct((batch_size, 4, hw), jnp.float32),
        grid_spec=pltpu.PrefetchScalarGridSpec(
            num_scalar_prefetch=1,                # inv_K scalars -> SMEM
            grid=(n_tiles, batch_size),           # batch innermost: pix tile
            in_specs=[                            # stays resident across it
                pl.BlockSpec((2, tile), lambda t, b, invk: (0, t)),
                pl.BlockSpec((1, 1, tile), lambda t, b, invk: (b, 0, t)),
            ],
            out_specs=pl.BlockSpec((1, 4, tile), lambda t, b, invk: (b, 0, t)),
        ),
        compiler_params=pltpu.CompilerParams(
            dimension_semantics=("parallel", "parallel")),
        cost_estimate=cost,
    )(invk_flat, pix_xy, depth_flat)
    return out


def _reference(depth, inv_K, batch_size, height, width):
    hw = height * width
    xs, ys = jnp.meshgrid(jnp.arange(width, dtype=jnp.float32),
                          jnp.arange(height, dtype=jnp.float32),
                          indexing="xy")
    pix = jnp.stack([xs.reshape(-1), ys.reshape(-1),
                     jnp.ones((hw,), jnp.float32)], axis=0)
    pix = jnp.broadcast_to(pix[None], (batch_size, 3, hw))
    cam = jnp.einsum("bij,bjk->bik", inv_K[:, :3, :3], pix)
    cam = depth.reshape(batch_size, 1, hw) * cam
    ones = jnp.ones((batch_size, 1, hw), jnp.float32)
    return jnp.concatenate([cam, ones], axis=1)


if __name__ == "__main__":
    B, H, W = 2, 16, 16  # small shapes; H*W = 256 (lane-dense multiple of 128)

    key = jax.random.PRNGKey(0)
    k_depth, k_K = jax.random.split(key)

    depth = jax.random.uniform(k_depth, (B, 1, H, W), jnp.float32,
                               minval=0.1, maxval=10.0)

    # Deterministic synthetic inverse intrinsics (B, 4, 4)
    fx, fy = float(W), float(H)
    cx, cy = W / 2.0, H / 2.0
    K = jnp.array([[fx, 0.0, cx, 0.0],
                   [0.0, fy, cy, 0.0],
                   [0.0, 0.0, 1.0, 0.0],
                   [0.0, 0.0, 0.0, 1.0]], jnp.float32)
    inv_K_single = jnp.linalg.inv(K)
    perturb = 1e-3 * jax.random.normal(k_K, (B, 4, 4), jnp.float32)
    inv_K = jnp.broadcast_to(inv_K_single[None], (B, 4, 4)) + perturb

    out = backproject_depth(depth, inv_K, B, H, W)
    out = jax.block_until_ready(out)

    ref = _reference(depth, inv_K, B, H, W)
    assert out.shape == (B, 4, H * W)
    assert jnp.allclose(out, ref, atol=1e-5, rtol=1e-5), "mismatch vs reference"

    print("KERNEL_OK")
</pallas_src>

<mosaic_0001>
module attributes {stable_mosaic.version = 11 : i64} {
  func.func @_backproject_kernel(%arg0: i32, %arg1: i32, %arg2: memref<18xf32, #tpu.memory_space<smem>>, %arg3: memref<2x256xf32, #tpu.memory_space<vmem>>, %arg4: memref<1x1x256xf32, #tpu.memory_space<vmem>>, %arg5: memref<1x4x256xf32, #tpu.memory_space<vmem>>) attributes {dimension_semantics = [#tpu.dimension_semantics<parallel>, #tpu.dimension_semantics<parallel>], iteration_bounds = array<i64: 1, 2>, scalar_prefetch = 1 : i64, scratch_operands = 0 : i64, tpu.core_type = #tpu.core_type<tc>, window_params = [{transform_indices = @transform_0, window_bounds = array<i64: 2, 256>}, {transform_indices = @transform_1, window_bounds = array<i64: 1, 1, 256>}, {transform_indices = @transform_2, window_bounds = array<i64: 1, 4, 256>}]} {
    %c9_i32 = arith.constant 9 : i32
    %0 = arith.muli %arg1, %c9_i32 : i32
    %c0_i32 = arith.constant 0 : i32
    %1 = arith.addi %0, %c0_i32 : i32
    %2 = arith.index_cast %1 : i32 to index
    %3 = memref.load %arg2[%2] : memref<18xf32, #tpu.memory_space<smem>>
    %c1_i32 = arith.constant 1 : i32
    %4 = arith.addi %0, %c1_i32 : i32
    %5 = arith.index_cast %4 : i32 to index
    %6 = memref.load %arg2[%5] : memref<18xf32, #tpu.memory_space<smem>>
    %c2_i32 = arith.constant 2 : i32
    %7 = arith.addi %0, %c2_i32 : i32
    %8 = arith.index_cast %7 : i32 to index
    %9 = memref.load %arg2[%8] : memref<18xf32, #tpu.memory_space<smem>>
    %c3_i32 = arith.constant 3 : i32
    %10 = arith.addi %0, %c3_i32 : i32
    %11 = arith.index_cast %10 : i32 to index
    %12 = memref.load %arg2[%11] : memref<18xf32, #tpu.memory_space<smem>>
    %c4_i32 = arith.constant 4 : i32
    %13 = arith.addi %0, %c4_i32 : i32
    %14 = arith.index_cast %13 : i32 to index
    %15 = memref.load %arg2[%14] : memref<18xf32, #tpu.memory_space<smem>>
    %c5_i32 = arith.constant 5 : i32
    %16 = arith.addi %0, %c5_i32 : i32
    %17 = arith.index_cast %16 : i32 to index
    %18 = memref.load %arg2[%17] : memref<18xf32, #tpu.memory_space<smem>>
    %c6_i32 = arith.constant 6 : i32
    %19 = arith.addi %0, %c6_i32 : i32
    %20 = arith.index_cast %19 : i32 to index
    %21 = memref.load %arg2[%20] : memref<18xf32, #tpu.memory_space<smem>>
    %c7_i32 = arith.constant 7 : i32
    %22 = arith.addi %0, %c7_i32 : i32
    %23 = arith.index_cast %22 : i32 to index
    %24 = memref.load %arg2[%23] : memref<18xf32, #tpu.memory_space<smem>>
    %c8_i32 = arith.constant 8 : i32
    %25 = arith.addi %0, %c8_i32 : i32
    %26 = arith.index_cast %25 : i32 to index
    %27 = memref.load %arg2[%26] : memref<18xf32, #tpu.memory_space<smem>>
    %c0 = arith.constant 0 : index
    %c0_0 = arith.constant 0 : index
    %28 = vector.load %arg3[%c0, %c0_0] : memref<2x256xf32, #tpu.memory_space<vmem>>, vector<1x256xf32>
    %c1 = arith.constant 1 : index
    %c0_1 = arith.constant 0 : index
    %29 = vector.load %arg3[%c1, %c0_1] : memref<2x256xf32, #tpu.memory_space<vmem>>, vector<1x256xf32>
    %c0_2 = arith.constant 0 : index
    %c0_3 = arith.constant 0 : index
    %c0_4 = arith.constant 0 : index
    %30 = vector.load %arg4[%c0_2, %c0_3, %c0_4] : memref<1x1x256xf32, #tpu.memory_space<vmem>>, vector<1x1x256xf32>
    %31 = vector.shape_cast %30 : vector<1x1x256xf32> to vector<1x256xf32>
    %32 = vector.broadcast %3 : f32 to vector<1x256xf32>
    %33 = arith.mulf %32, %28 : vector<1x256xf32>
    %34 = vector.broadcast %6 : f32 to vector<1x256xf32>
    %35 = arith.mulf %34, %29 : vector<1x256xf32>
    %36 = arith.addf %33, %35 : vector<1x256xf32>
    %37 = vector.broadcast %9 : f32 to vector<1x256xf32>
    %38 = arith.addf %36, %37 : vector<1x256xf32>
    %39 = arith.mulf %31, %38 : vector<1x256xf32>
    %c0_5 = arith.constant 0 : index
    %c0_6 = arith.constant 0 : index
    %c0_7 = arith.constant 0 : index
    %40 = vector.load %arg5[%c0_5, %c0_6, %c0_7] : memref<1x4x256xf32, #tpu.memory_space<vmem>>, vector<1x1x256xf32>
    %41 = vector.shape_cast %40 : vector<1x1x256xf32> to vector<1x256xf32>
    %42 = vector.shape_cast %39 : vector<1x256xf32> to vector<1x1x256xf32>
    tpu.vector_store %arg5[%c0_5, %c0_6, %c0_7], %42 {strides = array<i32>} : memref<1x4x256xf32, #tpu.memory_space<vmem>>, vector<1x1x256xf32>,
    %43 = vector.broadcast %12 : f32 to vector<1x256xf32>
    %44 = arith.mulf %43, %28 : vector<1x256xf32>
    %45 = vector.broadcast %15 : f32 to vector<1x256xf32>
    %46 = arith.mulf %45, %29 : vector<1x256xf32>
    %47 = arith.addf %44, %46 : vector<1x256xf32>
    %48 = vector.broadcast %18 : f32 to vector<1x256xf32>
    %49 = arith.addf %47, %48 : vector<1x256xf32>
    %50 = arith.mulf %31, %49 : vector<1x256xf32>
    %c0_8 = arith.constant 0 : index
    %c1_9 = arith.constant 1 : index
    %c0_10 = arith.constant 0 : index
    %51 = vector.load %arg5[%c0_8, %c1_9, %c0_10] : memref<1x4x256xf32, #tpu.memory_space<vmem>>, vector<1x1x256xf32>
    %52 = vector.shape_cast %51 : vector<1x1x256xf32> to vector<1x256xf32>
    %53 = vector.shape_cast %50 : vector<1x256xf32> to vector<1x1x256xf32>
    tpu.vector_store %arg5[%c0_8, %c1_9, %c0_10], %53 {strides = array<i32>} : memref<1x4x256xf32, #tpu.memory_space<vmem>>, vector<1x1x256xf32>,
    %54 = vector.broadcast %21 : f32 to vector<1x256xf32>
    %55 = arith.mulf %54, %28 : vector<1x256xf32>
    %56 = vector.broadcast %24 : f32 to vector<1x256xf32>
    %57 = arith.mulf %56, %29 : vector<1x256xf32>
    %58 = arith.addf %55, %57 : vector<1x256xf32>
    %59 = vector.broadcast %27 : f32 to vector<1x256xf32>
    %60 = arith.addf %58, %59 : vector<1x256xf32>
    %61 = arith.mulf %31, %60 : vector<1x256xf32>
    %c0_11 = arith.constant 0 : index
    %c2 = arith.constant 2 : index
    %c0_12 = arith.constant 0 : index
    %62 = vector.load %arg5[%c0_11, %c2, %c0_12] : memref<1x4x256xf32, #tpu.memory_space<vmem>>, vector<1x1x256xf32>
    %63 = vector.shape_cast %62 : vector<1x1x256xf32> to vector<1x256xf32>
    %64 = vector.shape_cast %61 : vector<1x256xf32> to vector<1x1x256xf32>
    tpu.vector_store %arg5[%c0_11, %c2, %c0_12], %64 {strides = array<i32>} : memref<1x4x256xf32, #tpu.memory_space<vmem>>, vector<1x1x256xf32>,
    %cst = arith.constant 1.000000e+00 : f32
    %65 = vector.broadcast %cst : f32 to vector<1x256xf32>
    %c0_13 = arith.constant 0 : index
    %c3 = arith.constant 3 : index
    %c0_14 = arith.constant 0 : index
    %66 = vector.load %arg5[%c0_13, %c3, %c0_14] : memref<1x4x256xf32, #tpu.memory_space<vmem>>, vector<1x1x256xf32>
    %67 = vector.shape_cast %66 : vector<1x1x256xf32> to vector<1x256xf32>
    %68 = vector.shape_cast %65 : vector<1x256xf32> to vector<1x1x256xf32>
    tpu.vector_store %arg5[%c0_13, %c3, %c0_14], %68 {strides = array<i32>} : memref<1x4x256xf32, #tpu.memory_space<vmem>>, vector<1x1x256xf32>,
    return
  }
  func.func @transform_0(%arg0: i32, %arg1: i32, %arg2: memref<18xf32, #tpu.memory_space<smem>>) -> (i32, i32) {
    %c0_i32 = arith.constant 0 : i32
    %c0_i32_0 = arith.constant 0 : i32
    return %c0_i32, %arg0 : i32, i32
  }
  func.func @transform_1(%arg0: i32, %arg1: i32, %arg2: memref<18xf32, #tpu.memory_space<smem>>) -> (i32, i32, i32) {
    %c0_i32 = arith.constant 0 : i32
    %c0_i32_0 = arith.constant 0 : i32
    return %arg1, %c0_i32, %arg0 : i32, i32, i32
  }
  func.func @transform_2(%arg0: i32, %arg1: i32, %arg2: memref<18xf32, #tpu.memory_space<smem>>) -> (i32, i32, i32) {
    %c0_i32 = arith.constant 0 : i32
    %c0_i32_0 = arith.constant 0 : i32
    return %arg1, %c0_i32, %arg0 : i32, i32, i32
  }
}

</mosaic_0001>

<bundles_post_ra>
// kernel: tpu_custom_call.1
= control target key start
LH: loop header
LB: loop body
LE: loop exit
PB: predicated region body
PF: predicated region fallthrough
CT: control target
= control target key end

     0   :  { %s644_s15 = smov [#allocation3]   ;;  %s854_s0 = inlined_call_operand.hbm [shape: f32[18], index: 0, kind: input, shape index: {}]   ;;  %s855_s1 = inlined_call_operand.hbm [shape: f32[2,256], index: 1, kind: input, shape index: {}]   ;;  %s856_s2 = inlined_call_operand.hbm [shape: f32[2,1,256], index: 2, kind: input, shape index: {}]   ;;  %s857_s3 = inlined_call_operand.hbm [shape: f32[2,4,256], index: 3, kind: output, shape index: {}]  }
   0x1   :  { %s9_s14 = sshll.u32 %s854_s0, 4  ;;  %s10_s14 = int_to_ptr.hbm [resolvable:$true] %s9_s14 }
   0x2   :  { %12 = dma.hbm_to_smem %s10_s14, 16, %s644_s15, [#allocation2] }
   0x3   :  { %606 = dma.done.wait [#allocation2], 16 }
   0x4   :  { %607 = vsyncadd [#allocation2], 4294967280 }
   0x5   :  { %15 = sfence }
   0x6   :  { %16 = vsyncpa [#allocation5], 0 }
   0x7   :  { %17 = vsyncpa [#allocation8], 0 }
   0x8   :  { %19 = vsyncpa [#allocation8 + $0x1], 0 }
   0x9   :  { %20 = vsyncpa [#allocation6], 0 }
   0xa   :  { %22 = vsyncpa [#allocation6 + $0x1], 0  ;;  %s670_s16 = smov 0   ;;  %s672_s17 = smov 0  }
   0xb   :  { %s674_s18 = smov 0   ;;  %s676_s19 = smov 0  }
   0xc   :  { %s678_s0 = smov 0   ;;  %s680_s20 = smov 0  }
   0xd LB: > { %s387_s21 = sadd.s32 4294967295, %s642_s20   ;;  %s388_s22 = sadd.s32 4294967294, %s642_s20   ;;  %s642_s20 = sphi %s680_s20, %s28_s20   ;;  %s638_s0 = sphi %s678_s0, %s871_s0   ;;  %s634_s19 = sphi %s676_s19, %s870_s19   ;;  %s630_s18 = sphi %s674_s18, %s869_s18   ;;  %s626_s17 = sphi %s672_s17, %s868_s17   ;;  %s622_s16 = sphi %s670_s16, %s867_s16  }
   0xe   : > { %p88_p0 = scmp.ne.s32.totalorder %s626_s17, %s622_s16  ;;  %p704_p1 = scmp.eq.s32.totalorder %s387_s21, 0 }
   0xf   : > { %p708_p2 = scmp.eq.s32.totalorder %s387_s21, 1  ;;  %p120_p3 = scmp.eq.s32.totalorder %s388_s22, 1 }
  0x10   : > { %p714_p4 = por %p704_p1, %p88_p0  ;;  %p389_p5 = scmp.ge.s32.totalorder %s642_s20, 1 }
  0x11   : > { %p719_p6 = por %p120_p3, %p88_p0  ;;  %p127_p7 = scmp.lt.s32.totalorder %s642_s20, 3 }
  0x12   : > { %s142_s29 = sshll.u32 %s855_s1, 4  ;;  %p391_p9 = scmp.ge.s32.totalorder %s642_s20, 2  ;;  %s143_s29 = int_to_ptr.hbm [resolvable:$true] %s142_s29 }
  0x13   : > { %p727_p8 = pnand %p389_p5, %p127_p7  ;;  %s645_s4 = smov [#allocation4]  }
  0x14   : > { %s144_s5 = sshll.u32 %s645_s4, 4  ;;  %s37_s6 = sadd.s32 1, %s638_s0  ;;  %s145_s5 = int_to_ptr.vmem [resolvable:$true] %s144_s5 }
  0x15   : > { %p415_p10 = pneg %p727_p8  ;;  %p38_p12 = scmp.ge.s32.totalorder %s37_s6, 2 }
  0x16   : > { %s75_s7 = sadd.s32 1, %s630_s18  ;;  %p82_p13 = scmp.ne.s32.totalorder %s630_s18, %s626_s17 }
  0x17   : > { %p416_p11 = pnand %p415_p10, %p704_p1  ;;  %p83_p0 = scmp.eq.s32.totalorder %s642_s20, 0 }
  0x18   : > { %s873_s6 = smov (%p38_p12, %s37_s6), 0  ;;  %p749_p5 = por %p708_p2, %p82_p13 }
  0x19   : > { %418 = dma.hbm_to_vmem [thread:$0]  (!%p416_p11), %s143_s29, 64, %s145_s5, [#allocation5]  }
  0x1a   : > { %p743_p3 = por %p83_p0, %p82_p13  ;;  %s70_s10 = ssub.s32 %s638_s0, %s873_s6 }
  0x1b   : > { %p428_p7 = scmp.lt.s32.totalorder %s642_s20, 2  ;;  %p73_p10 = scmp.eq.s32.totalorder %s70_s10, 0 }
  0x1c   : > { %s155_s11 = sand.u32 1, %s630_s18   ;;  %s393_s14 = sshll.u32 %s638_s0, 1 }
  0x1d   : > { %s392_s12 = sshll.u32 %s155_s11, 1  ;;  %s165_s22 = scalar_lea.hbm %s856_s2, %s393_s14 }
  0x1e   : > { %s758_s13 = scalar_select %p73_p10, %s630_s18, %s75_s7  }
  0x1f   : > { %s159_s27 = scalar_lea.vmem [#allocation7], %s392_s12  ;;  %s167_s24 = sshll.u32 %s165_s22, 4  ;;  %s168_s24 = int_to_ptr.hbm [resolvable:$true] %s167_s24 }
  0x20   : > { %s169_s28 = sshll.u32 %s159_s27, 4  ;;  %p420_p2 = pnand %p428_p7, %p743_p3  ;;  %s170_s28 = int_to_ptr.vmem [resolvable:$true] %s169_s28 }
  0x21   : > { %s156_s29 = scalar_lea.sflag [#allocation8], %s155_s11  ;;  %178 = sbr.rel (%p727_p8) target bundleno = 70 (0x46), region = 28 }
  0x22   : > { %422 = dma.hbm_to_vmem [thread:$0]  (!%p420_p2), %s168_s24, 32, %s170_s28, %s156_s29  }
  0x26   : > { %609 = dma.done.wait (%p704_p1), [#allocation5], 64  }
  0x27   : > { %611 = vsyncadd (%p704_p1), [#allocation5], 4294967232  ;;  %s773_s4 = sand.u32 1, %s626_s17  }
  0x28   : > { %s396_s5 = sshll.u32 %s773_s4, 1  ;;  %s186_s7 = scalar_lea.sflag [#allocation8], %s773_s4 }
  0x29   : > { %s777_s8 = scalar_lea.vmem [#allocation7], %s396_s5 }
  0x2a   : > { %613 = dma.done.wait (%p714_p4), %s186_s7, 32  }
  0x2b   : > { %615 = vsyncadd (%p714_p4), %s186_s7, 4294967264  ;;  %s397_s30 = sshll.u32 %s773_s4, 3  ;;  %s785_s23 = smul.u32 9, %s634_s19  ;;  %v244_v0 = vlaneseq  ;;  %v646_v2 = vmov 1.0   ;;  %v235_v12 = vld [vmem:[%s777_s8] sm:$0x3] }
  0x2c   : > { %s794_s14 = scalar_lea.vmem [#allocation9], %s397_s30  ;;  %v232_v3 = vld [vmem:[#allocation4] ss:$2 sm:$0x3] }
  0x2d   : > { %s215_s10 = sld [smem:[#allocation3 + %s785_s23]]  ;;  %s216_s11 = sadd.s32 1, %s785_s23  ;;  %vm789_vm0 = vcmp.lt.s32.totalorder %v244_v0, 256  ;;  %v234_v4 = vld [vmem:[#allocation4 + $0x1] ss:$2 sm:$0x3] }
  0x2e   : > { %s217_s25 = sld [smem:[#allocation3 + %s216_s11]]  ;;  %s218_s12 = sadd.s32 2, %s785_s23  ;;  %400 = vst.msk [vmem:[%s794_s14 + $0x3] ss:$4 sm:$0x3] %vm789_vm0, %v646_v2 }
  0x2f   : > { %s219_s15 = sld [smem:[#allocation3 + %s218_s12]]  ;;  %s220_s21 = sadd.s32 3, %s785_s23 }
  0x30   : > { %s221_s22 = sld [smem:[#allocation3 + %s220_s21]]  ;;  %s222_s27 = sadd.s32 4, %s785_s23 }
  0x31   : > { %s223_s28 = sld [smem:[#allocation3 + %s222_s27]]  ;;  %s224_s24 = sadd.s32 5, %s785_s23 }
  0x32   : > { %s225_s29 = sld [smem:[#allocation3 + %s224_s24]]  ;;  %s226_s5 = sadd.s32 6, %s785_s23 }
  0x33   : > { %v236_v5 = vstv %s215_s10  ;;  %s227_s7 = sld [smem:[#allocation3 + %s226_s5]]  ;;  %s228_s30 = sadd.s32 7, %s785_s23 }
  0x34   : > { %v237_v6 = vmul.f32 %v236_v5, %v232_v3  ;;  %v238_v7 = vstv %s217_s25  ;;  %s229_s11 = sld [smem:[#allocation3 + %s228_s30]]  ;;  %s230_s12 = sadd.s32 8, %s785_s23 }
  0x35   : > { %v239_v8 = vmul.f32 %v238_v7, %v234_v4  ;;  %v241_v9 = vstv %s219_s15  ;;  %s231_s21 = sld [smem:[#allocation3 + %s230_s12]]  ;;  %s406_s10 = sshll.u32 %s634_s19, 3 }
  0x36   : > { %v249_v11 = vstv %s221_s22  ;;  %s285_s25 = scalar_lea.hbm %s857_s3, %s406_s10  ;;  %s287_s19 = sshll.u32 %s794_s14, 4  ;;  %s288_s19 = int_to_ptr.vmem [resolvable:$true] %s287_s19 }
  0x37   : > { %v240_v10 = vadd.f32 %v239_v8, %v237_v6  ;;  %v250_v13 = vmul.f32 %v249_v11, %v232_v3  ;;  %v251_v15 = vstv %s223_s28  ;;  %s289_s15 = sshll.u32 %s285_s25, 4  ;;  %s272_s22 = scalar_lea.sflag [#allocation6], %s773_s4  ;;  %s290_s15 = int_to_ptr.hbm [resolvable:$true] %s289_s15 }
  0x38   : > { %v252_v16 = vmul.f32 %v251_v15, %v234_v4  ;;  %v254_v18 = vstv %s225_s29  ;;  %s568_s27 = sshra.s32 %s290_s15, 4  ;;  %s574_s5 = scalar_lea.hbm %s857_s3, 16  ;;  %s569_s27 = int_to_ptr.hbm [resolvable:$true] %s568_s27 }
  0x39   : > { %v242_v14 = vadd.f32 %v241_v9, %v240_v10  ;;  %v259_v19 = vstv %s227_s7  ;;  %s570_s28 = scalar_lea.hbm %s569_s27, 8  ;;  %p575_p11 = scmp.lt.s32.totalorder %s569_s27, %s857_s3 }
  0x3a   : > { %v253_v20 = vadd.f32 %v252_v16, %v250_v13  ;;  %v260_v21 = vmul.f32 %v259_v19, %v232_v3  ;;  %v261_v22 = vstv %s229_s11  ;;  %p571_p1 = scmp.ne.s32.totalorder %s569_s27, %s570_s28  ;;  %p576_p12 = scmp.lt.s32.totalorder %s574_s5, %s570_s28 }
  0x3b   : > { %v243_v17 = vmul.f32 %v242_v14, %v235_v12  ;;  %v262_v23 = vmul.f32 %v261_v22, %v234_v4  ;;  %v264_v25 = vstv %s231_s21 }
  0x3c   : > { %v255_v24 = vadd.f32 %v254_v18, %v253_v20  ;;  %p572_p4 = pnand %p571_p1, %p749_p5  ;;  %p577_p13 = por %p576_p12, %p575_p11 }
  0x3d   : > { %248 = vst.msk [vmem:[%s794_s14] ss:$4 sm:$0x3] %vm789_vm0, %v243_v17  ;;  %v263_v26 = vadd.f32 %v262_v23, %v260_v21 }
  0x3e   : > { %v256_v27 = vmul.f32 %v255_v24, %v235_v12  ;;  %p573_p8 = pneg %p572_p4 }
  0x3f   : > { %v265_v28 = vadd.f32 %v264_v25, %v263_v26 }
  0x40   : > { %398 = vst.msk [vmem:[%s794_s14 + $0x1] ss:$4 sm:$0x3] %vm789_vm0, %v256_v27  ;;  %p578_p0 = pnand %p577_p13, %p573_p8 }
  0x41   : > { %v266_v29 = vmul.f32 %v265_v28, %v235_v12 }
  0x43   : > { %399 = vst.msk [vmem:[%s794_s14 + $0x2] ss:$4 sm:$0x3] %vm789_vm0, %v266_v29 }
  0x44   : > { %581 = shalt.err (!%p578_p0)
}
  0x45   : > { %413 = dma.vmem_to_hbm [thread:$0]  (%p749_p5), %s288_s19, 128, %s290_s15, %s272_s22  }
  0x46 PF: > { %s301_s4 = sand.u32 1, %s622_s16   ;;  %p424_p3 = pnand %p391_p9, %p719_p6 }
  0x47   : > { %s302_s14 = scalar_lea.sflag [#allocation6], %s301_s4 }
  0x48   : > { %p425_p7 = pneg %p424_p3 }
  0x4a   : > { %617 = dma.done.wait (%p425_p7), %s302_s14, 128  }
  0x4b   : > { %619 = vsyncadd (%p425_p7), %s302_s14, 4294967168  ;;  %s28_s20 = sadd.s32 1, %s642_s20   ;;  %s867_s16 = smov %s626_s17 }
  0x4c   : > { %p25_p10 = scmp.ge.s32.totalorder %s28_s20, 4   ;;  %s868_s17 = smov %s630_s18 }
  0x4d   : > { %s869_s18 = smov %s758_s13  ;;  %s870_s19 = smov %s638_s0 }
  0x4e   : > { %s871_s0 = smov %s873_s6  ;;  %27 = sbr.rel (!%p25_p10) target bundleno = 13 (0xd), region = 83 }
  0x53   :  { %308 = vsyncpa [#allocation5], 1 }
  0x54   :  { %310 = vsyncpa [#allocation5 + $0x1], 1 }
  0x55   :  { %311 = vsyncpa [#allocation8], 1 }
  0x56   :  { %313 = vsyncpa [#allocation8 + $0x1], 1 }
  0x57   :  { %314 = vsyncpa [#allocation6], 1 }
  0x58   :  { %316 = vsyncpa [#allocation6 + $0x1], 1 }

</bundles_post_ra>
